<compile_context>
chip_gen: v7x
topology: tpu7x:2x2x1
jax: 0.10.0
libtpu: 0.0.40
codegen_flags: <defaults>
</compile_context>

<pallas_src>
import jax
import jax.numpy as jnp
from jax.experimental import pallas as pl
from jax.experimental.pallas import tpu as pltpu

MARGIN = 0.1       # DynamicTripletLoss(margin=0.1)
NUM_NUTRS = 4      # cal_weight(num_nutrs=4)
SCALE = 0.05       # cal_weight(scale=0.05)


def _fused_multi_triplet_kernel(nutrs_ref, anc_ref, tgt_ref, out_ref):
    """One grid step == one (anchor, target) modality pair."""
    B = nutrs_ref.shape[0]

    # ---- cal_weight: w[i, j] = SCALE * sum_k |nutrs[i, k] - nutrs[j, k]|
    # (symmetric, zero diagonal — identical to the reference's triu-fill +
    #  transpose-add construction).  Single transpose of the nutrient matrix.
    n = nutrs_ref[...].astype(jnp.float32)            # (B, NUM_NUTRS)
    nT = jnp.transpose(n, (1, 0))                     # (NUM_NUTRS, B), one XLU op
    w = jnp.zeros((B, B), jnp.float32)
    for k in range(NUM_NUTRS):                        # static unrolled loop
        w = w + jnp.abs(n[:, k:k + 1] - nT[k:k + 1, :])
    w = w * SCALE

    # ---- this pair's embeddings
    im = anc_ref[0]                                   # (B, D)
    rec = tgt_ref[0]                                  # (B, D)
    im_f = im.astype(jnp.float32)
    rec_f = rec.astype(jnp.float32)

    # F.normalize(x, dim=-1): x / max(||x||, 1e-12) == x * rsqrt(max(||x||^2, 1e-24))
    im_n = im_f * jax.lax.rsqrt(
        jnp.maximum(jnp.sum(im_f * im_f, axis=-1, keepdims=True), 1e-24))
    rec_n = rec_f * jax.lax.rsqrt(
        jnp.maximum(jnp.sum(rec_f * rec_f, axis=-1, keepdims=True), 1e-24))

    # Keep MXU operands narrow when the inputs arrive as bf16.
    if anc_ref.dtype == jnp.bfloat16:
        im_mm = im_n.astype(jnp.bfloat16)
        rec_mm = rec_n.astype(jnp.bfloat16)
    else:
        im_mm, rec_mm = im_n, rec_n

    # cosine distance: 1 - im_n @ rec_n.T  (MXU, contract over D, f32 accum)
    sim = jax.lax.dot_general(im_mm, rec_mm, (((1,), (1,)), ((), ())),
                              preferred_element_type=jnp.float32)
    s0 = 1.0 - sim

    row = jax.lax.broadcasted_iota(jnp.int32, (B, B), 0)
    col = jax.lax.broadcasted_iota(jnp.int32, (B, B), 1)
    eye = row == col

    # diag extracted BEFORE the in-place margin subtraction (reference's .diag()
    # copies).  One masked reduction; d2 is just the transpose of d1.
    d1 = jnp.sum(jnp.where(eye, s0, 0.0), axis=1, keepdims=True)   # (B, 1)
    d2 = jnp.transpose(d1, (1, 0))                                 # (1, B)

    # dynamic margin (weight matrix) is subtracted twice in the reference
    s = s0 - 2.0 * w

    # MarginRankingLoss(margin, reduction='none') with y = 1:
    #   max(0, -(input1 - input2) + margin)
    cost_im = jnp.maximum(d1 - s + MARGIN, 0.0)        # NOT diag-masked (as in ref)
    cost_rec = jnp.maximum(d2 - s + MARGIN, 0.0)
    cost_rec = jnp.where(eye, 0.0, cost_rec)           # masked_fill_(pos, 0)

    # reduction is None -> sum / (B - 1)   (B > 1 assumed, as in the reference)
    total = jnp.sum(cost_im + cost_rec) / (B - 1)

    # Lane-dense unmasked store of the per-pair scalar.
    out_ref[...] = jnp.broadcast_to(total, out_ref.shape)


def _fused_multi_triplet(nutrs, anchors, targets):
    """Per-pair losses for stacked (P, B, D) anchor / target embeddings."""
    P, B, D = anchors.shape
    out = pl.pallas_call(
        _fused_multi_triplet_kernel,
        out_shape=jax.ShapeDtypeStruct((P, 8, 128), jnp.float32),
        grid_spec=pltpu.PrefetchScalarGridSpec(
            num_scalar_prefetch=0,
            grid=(P,),
            in_specs=[
                pl.BlockSpec((B, NUM_NUTRS), lambda p: (0, 0)),   # nutrs (resident)
                pl.BlockSpec((1, B, D), lambda p: (p, 0, 0)),     # anchors[p]
                pl.BlockSpec((1, B, D), lambda p: (p, 0, 0)),     # targets[p]
            ],
            out_specs=pl.BlockSpec((1, 8, 128), lambda p: (p, 0, 0)),
        ),
        compiler_params=pltpu.CompilerParams(
            dimension_semantics=("parallel",)),   # shards pairs across TCs on v7x
    )(nutrs, anchors, targets)
    return out[:, 0, 0]                            # (P,) per-pair losses


@jax.jit
def _reduce_pairs(nutrs, anchors, targets):
    per_pair = _fused_multi_triplet(nutrs, anchors, targets)
    return jnp.sum(per_pair) / anchors.shape[0]    # losses / count


def dynamic_weighted_multi_triplet_loss(target_dict, nutrs):
    """Forward pass of DynamicWeightedMultiTripletLoss."""
    # Replicate the reference's iterate-while-mutating pair enumeration:
    # for keys [a, b, c] the pairs are (a, b), (a, c), (c, b).
    keys = list(target_dict.keys())
    pairs = []
    for src_key in keys:
        keys.remove(src_key)
        if not len(keys):
            break
        for tgt_key in keys:
            pairs.append((src_key, tgt_key))

    anchors = jnp.stack([target_dict[a] for a, _ in pairs])   # (P, B, D)
    targets = jnp.stack([target_dict[b] for _, b in pairs])   # (P, B, D)
    return _reduce_pairs(nutrs, anchors, targets)


if __name__ == "__main__":
    key = jax.random.PRNGKey(0)
    k1, k2, k3, k4 = jax.random.split(key, 4)
    B, D = 8, 32
    target_dict = {
        "image":  jax.random.normal(k1, (B, D), jnp.float32),
        "recipe": jax.random.normal(k2, (B, D), jnp.float32),
        "title":  jax.random.normal(k3, (B, D), jnp.float32),
    }
    nutrs = jax.random.uniform(k4, (B, NUM_NUTRS), dtype=jnp.float32) * 10.0

    loss = dynamic_weighted_multi_triplet_loss(target_dict, nutrs)
    jax.block_until_ready(loss)
    print("KERNEL_OK")
</pallas_src>

<mosaic_0001>
module attributes {stable_mosaic.version = 11 : i64} {
  func.func @_fused_multi_triplet_kernel(%arg0: i32, %arg1: memref<8x4xf32, #tpu.memory_space<vmem>>, %arg2: memref<1x8x32xf32, #tpu.memory_space<vmem>>, %arg3: memref<1x8x32xf32, #tpu.memory_space<vmem>>, %arg4: memref<1x8x128xf32, #tpu.memory_space<vmem>>) attributes {dimension_semantics = [#tpu.dimension_semantics<parallel>], iteration_bounds = array<i64: 3>, scalar_prefetch = 0 : i64, scratch_operands = 0 : i64, tpu.core_type = #tpu.core_type<tc>, window_params = [{pipeline_mode = #tpu.pipeline_mode<synchronous>, transform_indices = @transform_0, window_bounds = array<i64: 8, 4>}, {transform_indices = @transform_1, window_bounds = array<i64: 1, 8, 32>}, {transform_indices = @transform_2, window_bounds = array<i64: 1, 8, 32>}, {transform_indices = @transform_3, window_bounds = array<i64: 1, 8, 128>}]} {
    %c0 = arith.constant 0 : index
    %c0_0 = arith.constant 0 : index
    %0 = vector.load %arg1[%c0, %c0_0] : memref<8x4xf32, #tpu.memory_space<vmem>>, vector<8x4xf32>
    %1 = tpu.transpose %0, [1, 0] : vector<8x4xf32> -> vector<4x8xf32>
    %cst = arith.constant 0.000000e+00 : f32
    %2 = vector.broadcast %cst : f32 to vector<8x8xf32>
    %3 = vector.extract_strided_slice %0 {offsets = [0, 0], sizes = [8, 1], strides = [1, 1]} : vector<8x4xf32> to vector<8x1xf32>
    %4 = vector.extract_strided_slice %1 {offsets = [0, 0], sizes = [1, 8], strides = [1, 1]} : vector<4x8xf32> to vector<1x8xf32>
    %5 = vector.broadcast %3 : vector<8x1xf32> to vector<8x8xf32>
    %6 = vector.broadcast %4 : vector<1x8xf32> to vector<8x8xf32>
    %7 = arith.subf %5, %6 : vector<8x8xf32>
    %8 = math.absf %7 : vector<8x8xf32>
    %9 = arith.addf %2, %8 : vector<8x8xf32>
    %10 = vector.extract_strided_slice %0 {offsets = [0, 1], sizes = [8, 1], strides = [1, 1]} : vector<8x4xf32> to vector<8x1xf32>
    %11 = vector.extract_strided_slice %1 {offsets = [1, 0], sizes = [1, 8], strides = [1, 1]} : vector<4x8xf32> to vector<1x8xf32>
    %12 = vector.broadcast %10 : vector<8x1xf32> to vector<8x8xf32>
    %13 = vector.broadcast %11 : vector<1x8xf32> to vector<8x8xf32>
    %14 = arith.subf %12, %13 : vector<8x8xf32>
    %15 = math.absf %14 : vector<8x8xf32>
    %16 = arith.addf %9, %15 : vector<8x8xf32>
    %17 = vector.extract_strided_slice %0 {offsets = [0, 2], sizes = [8, 1], strides = [1, 1]} : vector<8x4xf32> to vector<8x1xf32>
    %18 = vector.extract_strided_slice %1 {offsets = [2, 0], sizes = [1, 8], strides = [1, 1]} : vector<4x8xf32> to vector<1x8xf32>
    %19 = vector.broadcast %17 : vector<8x1xf32> to vector<8x8xf32>
    %20 = vector.broadcast %18 : vector<1x8xf32> to vector<8x8xf32>
    %21 = arith.subf %19, %20 : vector<8x8xf32>
    %22 = math.absf %21 : vector<8x8xf32>
    %23 = arith.addf %16, %22 : vector<8x8xf32>
    %24 = vector.extract_strided_slice %0 {offsets = [0, 3], sizes = [8, 1], strides = [1, 1]} : vector<8x4xf32> to vector<8x1xf32>
    %25 = vector.extract_strided_slice %1 {offsets = [3, 0], sizes = [1, 8], strides = [1, 1]} : vector<4x8xf32> to vector<1x8xf32>
    %26 = vector.broadcast %24 : vector<8x1xf32> to vector<8x8xf32>
    %27 = vector.broadcast %25 : vector<1x8xf32> to vector<8x8xf32>
    %28 = arith.subf %26, %27 : vector<8x8xf32>
    %29 = math.absf %28 : vector<8x8xf32>
    %30 = arith.addf %23, %29 : vector<8x8xf32>
    %cst_1 = arith.constant 5.000000e-02 : f32
    %31 = vector.broadcast %cst_1 : f32 to vector<8x8xf32>
    %32 = arith.mulf %30, %31 : vector<8x8xf32>
    %c0_2 = arith.constant 0 : index
    %c0_3 = arith.constant 0 : index
    %c0_4 = arith.constant 0 : index
    %33 = vector.load %arg2[%c0_2, %c0_3, %c0_4] : memref<1x8x32xf32, #tpu.memory_space<vmem>>, vector<1x8x32xf32>
    %34 = vector.shape_cast %33 : vector<1x8x32xf32> to vector<8x32xf32>
    %c0_5 = arith.constant 0 : index
    %c0_6 = arith.constant 0 : index
    %c0_7 = arith.constant 0 : index
    %35 = vector.load %arg3[%c0_5, %c0_6, %c0_7] : memref<1x8x32xf32, #tpu.memory_space<vmem>>, vector<1x8x32xf32>
    %36 = vector.shape_cast %35 : vector<1x8x32xf32> to vector<8x32xf32>
    %37 = arith.mulf %34, %34 : vector<8x32xf32>
    %cst_8 = arith.constant dense<0.000000e+00> : vector<8xf32>
    %38 = vector.multi_reduction <add>, %37, %cst_8 [1] : vector<8x32xf32> to vector<8xf32>
    %39 = vector.shape_cast %38 : vector<8xf32> to vector<8x1xf32>
    %cst_9 = arith.constant 1.000000e-24 : f32
    %40 = vector.broadcast %cst_9 : f32 to vector<8x1xf32>
    %41 = arith.maximumf %39, %40 : vector<8x1xf32>
    %42 = math.rsqrt %41 : vector<8x1xf32>
    %43 = vector.broadcast %42 : vector<8x1xf32> to vector<8x32xf32>
    %44 = arith.mulf %34, %43 : vector<8x32xf32>
    %45 = arith.mulf %36, %36 : vector<8x32xf32>
    %cst_10 = arith.constant dense<0.000000e+00> : vector<8xf32>
    %46 = vector.multi_reduction <add>, %45, %cst_10 [1] : vector<8x32xf32> to vector<8xf32>
    %47 = vector.shape_cast %46 : vector<8xf32> to vector<8x1xf32>
    %cst_11 = arith.constant 1.000000e-24 : f32
    %48 = vector.broadcast %cst_11 : f32 to vector<8x1xf32>
    %49 = arith.maximumf %47, %48 : vector<8x1xf32>
    %50 = math.rsqrt %49 : vector<8x1xf32>
    %51 = vector.broadcast %50 : vector<8x1xf32> to vector<8x32xf32>
    %52 = arith.mulf %36, %51 : vector<8x32xf32>
    %cst_12 = arith.constant dense<0.000000e+00> : vector<8x8xf32>
    %53 = tpu.matmul %44, %52, %cst_12 {dimension_numbers = #tpu.dot_dimension_numbers<[1], [1], [0], [0], [0, 0, 1, 0], [], []>} : vector<8x32xf32>, vector<8x32xf32>, vector<8x8xf32> -> vector<8x8xf32>
    %cst_13 = arith.constant 1.000000e+00 : f32
    %54 = vector.broadcast %cst_13 : f32 to vector<8x8xf32>
    %55 = arith.subf %54, %53 : vector<8x8xf32>
    %56 = tpu.iota {dimensions = array<i32: 0>} : vector<8x8xi32>
    %57 = tpu.iota {dimensions = array<i32: 1>} : vector<8x8xi32>
    %58 = arith.cmpi eq, %56, %57 : vector<8x8xi32>
    %cst_14 = arith.constant 0.000000e+00 : f32
    %59 = vector.broadcast %cst_14 : f32 to vector<8x8xf32>
    %60 = arith.select %58, %55, %59 : vector<8x8xi1>, vector<8x8xf32>
    %cst_15 = arith.constant dense<0.000000e+00> : vector<8xf32>
    %61 = vector.multi_reduction <add>, %60, %cst_15 [1] : vector<8x8xf32> to vector<8xf32>
    %62 = vector.shape_cast %61 : vector<8xf32> to vector<8x1xf32>
    %63 = tpu.transpose %62, [1, 0] : vector<8x1xf32> -> vector<1x8xf32>
    %cst_16 = arith.constant 2.000000e+00 : f32
    %64 = vector.broadcast %cst_16 : f32 to vector<8x8xf32>
    %65 = arith.mulf %64, %32 : vector<8x8xf32>
    %66 = arith.subf %55, %65 : vector<8x8xf32>
    %67 = vector.broadcast %62 : vector<8x1xf32> to vector<8x8xf32>
    %68 = arith.subf %67, %66 : vector<8x8xf32>
    %cst_17 = arith.constant 1.000000e-01 : f32
    %69 = vector.broadcast %cst_17 : f32 to vector<8x8xf32>
    %70 = arith.addf %68, %69 : vector<8x8xf32>
    %cst_18 = arith.constant 0.000000e+00 : f32
    %71 = vector.broadcast %cst_18 : f32 to vector<8x8xf32>
    %72 = arith.maximumf %70, %71 : vector<8x8xf32>
    %73 = vector.broadcast %63 : vector<1x8xf32> to vector<8x8xf32>
    %74 = arith.subf %73, %66 : vector<8x8xf32>
    %cst_19 = arith.constant 1.000000e-01 : f32
    %75 = vector.broadcast %cst_19 : f32 to vector<8x8xf32>
    %76 = arith.addf %74, %75 : vector<8x8xf32>
    %cst_20 = arith.constant 0.000000e+00 : f32
    %77 = vector.broadcast %cst_20 : f32 to vector<8x8xf32>
    %78 = arith.maximumf %76, %77 : vector<8x8xf32>
    %cst_21 = arith.constant 0.000000e+00 : f32
    %79 = vector.broadcast %cst_21 : f32 to vector<8x8xf32>
    %80 = arith.select %58, %79, %78 : vector<8x8xi1>, vector<8x8xf32>
    %81 = arith.addf %72, %80 : vector<8x8xf32>
    %82 = vector.shape_cast %81 : vector<8x8xf32> to vector<1x8x8xf32>
    %cst_22 = arith.constant dense<0.000000e+00> : vector<1xf32>
    %83 = vector.multi_reduction <add>, %82, %cst_22 [1, 2] : vector<1x8x8xf32> to vector<1xf32>
    %84 = vector.shape_cast %83 : vector<1xf32> to vector<1x1x1xf32>
    %85 = vector.extract %84[0, 0, 0] : f32 from vector<1x1x1xf32>
    %cst_23 = arith.constant 7.000000e+00 : f32
    %86 = arith.divf %85, %cst_23 : f32
    %87 = vector.broadcast %86 : f32 to vector<1x8x128xf32>
    %c0_24 = arith.constant 0 : index
    %c0_25 = arith.constant 0 : index
    %c0_26 = arith.constant 0 : index
    %88 = vector.load %arg4[%c0_24, %c0_25, %c0_26] : memref<1x8x128xf32, #tpu.memory_space<vmem>>, vector<1x8x128xf32>
    tpu.vector_store %arg4[%c0_24, %c0_25, %c0_26], %87 {strides = array<i32>} : memref<1x8x128xf32, #tpu.memory_space<vmem>>, vector<1x8x128xf32>,
    return
  }
  func.func @transform_0(%arg0: i32) -> (i32, i32) {
    %c0_i32 = arith.constant 0 : i32
    %c0_i32_0 = arith.constant 0 : i32
    %c0_i32_1 = arith.constant 0 : i32
    return %c0_i32, %c0_i32_0 : i32, i32
  }
  func.func @transform_1(%arg0: i32) -> (i32, i32, i32) {
    %c0_i32 = arith.constant 0 : i32
    %c0_i32_0 = arith.constant 0 : i32
    %c0_i32_1 = arith.constant 0 : i32
    return %arg0, %c0_i32, %c0_i32_0 : i32, i32, i32
  }
  func.func @transform_2(%arg0: i32) -> (i32, i32, i32) {
    %c0_i32 = arith.constant 0 : i32
    %c0_i32_0 = arith.constant 0 : i32
    %c0_i32_1 = arith.constant 0 : i32
    return %arg0, %c0_i32, %c0_i32_0 : i32, i32, i32
  }
  func.func @transform_3(%arg0: i32) -> (i32, i32, i32) {
    %c0_i32 = arith.constant 0 : i32
    %c0_i32_0 = arith.constant 0 : i32
    %c0_i32_1 = arith.constant 0 : i32
    return %arg0, %c0_i32, %c0_i32_0 : i32, i32, i32
  }
}

</mosaic_0001>

<bundles_post_ra>
// kernel: _reduce_pairs.1
= control target key start
LH: loop header
LB: loop body
LE: loop exit
PB: predicated region body
PF: predicated region fallthrough
CT: control target
= control target key end

     0   :  { %8 = vsyncpa [#allocation3], 0  ;;  %s931_s0 = inlined_call_operand.vmem [shape: f32[8,4], index: 0, kind: input, shape index: {}]   ;;  %s932_s1 = inlined_call_operand.hbm [shape: f32[3,8,32], index: 1, kind: input, shape index: {}]   ;;  %s933_s2 = inlined_call_operand.hbm [shape: f32[3,8,32], index: 2, kind: input, shape index: {}]   ;;  %s934_s3 = inlined_call_operand.vmem [shape: f32[3,8,128], index: 3, kind: output, shape index: {}]  }
   0x1   :  { %10 = vsyncpa [#allocation3 + $0x1], 0 }
   0x2   :  { %11 = vsyncpa [#allocation5], 0 }
   0x3   :  { %13 = vsyncpa [#allocation5 + $0x1], 0  ;;  %s766_s12 = smov 0   ;;  %s768_s13 = smov 0  }
   0x4   :  { %s770_s14 = smov 0   ;;  %s772_s15 = smov 0  }
   0x5 LB: > { %s785_s16 = sadd.s32 4294967295, %s736_s15   ;;  %s788_s17 = sadd.s32 1, %s736_s15   ;;  %s736_s15 = sphi %s772_s15, %s946_s15   ;;  %s732_s14 = sphi %s770_s14, %s945_s14   ;;  %s728_s13 = sphi %s768_s13, %s944_s13   ;;  %s724_s12 = sphi %s766_s12, %s943_s12  }
   0x6   : > { %s44_s18 = ssub.s32 %s736_s15, %s788_s17  ;;  %s47_s19 = sadd.s32 1, %s732_s14 }
   0x7   : > { %p45_p0 = scmp.eq.s32.totalorder %s44_s18, 0  ;;  %p54_p1 = scmp.ne.s32.totalorder %s732_s14, %s728_s13 }
   0x8   : > { %p55_p2 = scmp.eq.s32.totalorder %s736_s15, 0  ;;  %p60_p3 = scmp.ne.s32.totalorder %s728_s13, %s724_s12 }
   0x9   : > { %s798_s20 = scalar_select %p45_p0, %s732_s14, %s47_s19  }
   0xa   : > { %p56_p4 = por %p55_p2, %p54_p1  ;;  %p61_p5 = scmp.eq.s32.totalorder %s785_s16, 0 }
   0xb   : > { %p590_p6 = scmp.lt.s32.totalorder %s736_s15, 3  ;;  %s807_s22 = sand.u32 1, %s732_s14  }
   0xc   : > { %p802_p7 = por %p61_p5, %p60_p3  ;;  %s558_s23 = sshll.u32 %s807_s22, 3 }
   0xd   : > { %s559_s24 = sshll.u32 %s736_s15, 7  ;;  %s143_s28 = scalar_lea.vmem [#allocation2], %s558_s23 }
   0xe   : > { %s936_s21 = scalar_select %p802_p7, 1, 0 }
   0xf   : > { %s816_s27 = scalar_lea.hbm %s932_s1, %s559_s24  ;;  %s150_s29 = sshll.u32 %s143_s28, 4  ;;  %s820_s29 = int_to_ptr.vmem [resolvable:$true] %s150_s29 }
  0x10   : > { %p822_p8 = pnand %p590_p6, %p56_p4  ;;  %s140_s4 = scalar_lea.sflag [#allocation3], %s807_s22 }
  0x11   : > { %s638_s5 = scalar_lea.hbm %s816_s27, 128  ;;  %s643_s8 = scalar_lea.hbm %s932_s1, 384 }
  0x12   : > { %p639_p11 = scmp.ne.s32.totalorder %s816_s27, %s638_s5  ;;  %p640_p12 = pneg %p822_p8 }
  0x13   : > { %p644_p1 = scmp.lt.u32.totalorder %s816_s27, %s932_s1  ;;  %p645_p2 = scmp.lt.u32.totalorder %s643_s8, %s638_s5 }
  0x14   : > { %p641_p13 = pnand %p640_p12, %p639_p11  ;;  %p647_p4 = scmp.lt.u32.totalorder %s638_s5, %s816_s27 }
  0x15   : > { %p646_p3 = por %p645_p2, %p644_p1 }
  0x16   : > { %p642_p0 = pneg %p641_p13 }
  0x17   : > { %p648_p5 = por %p647_p4, %p646_p3 }
  0x19   : > { %p649_p6 = pnand %p648_p5, %p642_p0 }
  0x1b   : > { %652 = shalt.err (!%p649_p6)
}
  0x1c   : > { %s653_s11 = scalar_lea.vmem %s820_s29, 128  ;;  %s738_s12 = smov [#allocation2]  }
  0x1d   : > { %p654_p11 = scmp.ne.s32.totalorder %s820_s29, %s653_s11  ;;  %s658_s18 = sshll.u32 %s738_s12, 4  ;;  %s659_s18 = int_to_ptr.vmem [resolvable:$false] %s658_s18 }
  0x1e   : > { %s660_s19 = scalar_lea.vmem %s659_s18, 256  ;;  %p661_p10 = scmp.lt.s32.totalorder %s820_s29, %s659_s18 }
  0x1f   : > { %p656_p13 = pnand %p654_p11, %p640_p12  ;;  %p662_p1 = scmp.lt.s32.totalorder %s660_s19, %s653_s11 }
  0x21   : > { %p657_p9 = pneg %p656_p13  ;;  %p663_p2 = por %p662_p1, %p661_p10 }
  0x23   : > { %p664_p3 = pnand %p663_p2, %p657_p9 }
  0x25   : > { %667 = shalt.err (!%p664_p3)
}
  0x26   : > { %586 = dma.hbm_to_vmem [thread:$0]  (!%p822_p8), %s816_s27, 128, %s820_s29, %s140_s4  }
  0x27   : > { %p938_p0 = scmp.lt.s32.totalorder %s736_s15, 4  ;;  %p939_p4 = scmp.ge.s32.totalorder %s736_s15, 1 }
  0x28   : > { %s867_s5 = scalar_lea.hbm %s933_s2, %s559_s24  ;;  %s161_s6 = scalar_lea.vmem [#allocation4], %s558_s23 }
  0x29   : > { %p858_p5 = pnand %p939_p4, %p938_p0  ;;  %s168_s7 = sshll.u32 %s161_s6, 4  ;;  %s169_s7 = int_to_ptr.vmem [resolvable:$true] %s168_s7 }
  0x2a   : > { %s158_s27 = scalar_lea.sflag [#allocation5], %s807_s22  ;;  %s668_s29 = scalar_lea.hbm %s867_s5, 128 }
  0x2b   : > { %s940_s25 = scalar_select %p858_p5, 1, 0 }
  0x2c   : > { %p669_p9 = scmp.ne.s32.totalorder %s867_s5, %s668_s29  ;;  %s673_s24 = scalar_lea.hbm %s933_s2, 384 }
  0x2d   : > { %p674_p11 = scmp.lt.u32.totalorder %s867_s5, %s933_s2  ;;  %p675_p13 = scmp.lt.u32.totalorder %s673_s24, %s668_s29 }
  0x2e   : > { %p671_p10 = pnand %p669_p9, %p640_p12  ;;  %p677_p2 = scmp.lt.u32.totalorder %s668_s29, %s867_s5 }
  0x2f   : > { %p676_p1 = por %p675_p13, %p674_p11 }
  0x30   : > { %p672_p6 = pneg %p671_p10 }
  0x31   : > { %p678_p3 = por %p677_p2, %p676_p1 }
  0x33   : > { %p679_p0 = pnand %p678_p3, %p672_p6 }
  0x35   : > { %682 = shalt.err (!%p679_p0)
}
  0x36   : > { %s683_s22 = scalar_lea.vmem %s169_s7, 128  ;;  %s739_s23 = smov [#allocation4]  }
  0x37   : > { %p684_p4 = scmp.ne.s32.totalorder %s169_s7, %s683_s22  ;;  %s688_s10 = sshll.u32 %s739_s23, 4  ;;  %s689_s10 = int_to_ptr.vmem [resolvable:$false] %s688_s10 }
  0x38   : > { %s690_s11 = scalar_lea.vmem %s689_s10, 256  ;;  %p691_p7 = scmp.lt.s32.totalorder %s169_s7, %s689_s10 }
  0x39   : > { %p686_p9 = pnand %p684_p4, %p640_p12  ;;  %p692_p5 = scmp.lt.s32.totalorder %s690_s11, %s683_s22 }
  0x3b   : > { %p687_p10 = pneg %p686_p9  ;;  %p693_p11 = por %p692_p5, %p691_p7 }
  0x3d   : > { %p694_p13 = pnand %p693_p11, %p687_p10 }
  0x3f   : > { %697 = shalt.err (!%p694_p13)
}
  0x40   : > { %589 = dma.hbm_to_vmem [thread:$0]  (!%p822_p8), %s867_s5, 128, %s169_s7, %s158_s27  }
  0x41   : > { %p941_p6 = scmp.ne.s32.totalorder %s940_s25, 0 }
  0x42   : > { %s179_s12 = sand.u32 (!%p941_p6), 1, %s728_s13   ;;  %p942_p12 = scmp.ne.s32.totalorder (!%p941_p6), %s936_s21, 0 }
  0x43   : > { %177 = sbr.rel (%p941_p6) target bundleno = 949 (0x3b5), region = 32  ;;  %s563_s18 = sshll.u32 (!%p941_p6), %s179_s12, 3 }
  0x44   : > { %s180_s19 = scalar_lea.sflag (!%p941_p6), [#allocation3], %s179_s12  ;;  %s183_s26 = scalar_lea.vmem (!%p941_p6), [#allocation2], %s563_s18 }
  0x4a   : > { %715 = dma.done.wait (%p942_p12), %s180_s19, 128  }
  0x4b   : > { %717 = vsyncadd (%p942_p12), %s180_s19, 4294967168  ;;  %s189_s28 = scalar_lea.sflag [#allocation5], %s179_s12  ;;  %s192_s6 = scalar_lea.vmem [#allocation4], %s563_s18 }
  0x4c   : > { %719 = dma.done.wait (%p942_p12), %s189_s28, 128  }
  0x4d   : > { %721 = vsyncadd (%p942_p12), %s189_s28, 4294967168  ;;  %v303_v0 = vld [vmem:[%s192_s6] sm:$0xff]  ;;  %vm305_vm0 = vcmask 261120   ;;  %v302_v1 = vld [vmem:[%s183_s26] sm:$0xff]  ;;  %v740_v6 = vmov 0.0   ;;  %vm741_vm1 = vmmov 0   ;;  %v261_v20 = vlaneseq }
  0x4e   : > { %v312_v2 = vmul.f32 %v303_v0, %v303_v0  ;;  %v304_v3 = vmul.f32 %v302_v1, %v302_v1  ;;  %572 = vmatprep.subr.mxu0 %v740_v6  ;;  %574 = vmatprep.mubr.msk.f32.mxu0 %vm741_vm1, %v740_v6  ;;  %v223_v7 = vld [vmem:[%s931_s0] sm:$0xff]  ;;  %v742_v8 = vmov 0   ;;  %v743_v9 = vmov 2   ;;  %p219_p7 = scmp.lt.s32.totalorder %s785_s16, 2 }
  0x4f   : > { %629 = vset.pattern.permute.xlu1 %v742_v8  ;;  %v744_v18 = vmov 3   ;;  %v745_v19 = vmov 1   ;;  %v262_v21 = vshrl.u32 %v261_v20, 7  ;;  %v399_v22 = vand.u32 127, %v261_v20 }
  0x50   : > { %v313_v4 = vsel %vm305_vm0, %v312_v2, 0.0  ;;  %v306_v5 = vsel %vm305_vm0, %v304_v3, 0.0  ;;  %258 = vperm.xlu1 %629, %v223_v7   ;;  %630 = vset.pattern.permute.xlu0 %v745_v19  ;;  %vm402_vm3 = vcmask 64512   ;;  %s948_s16 = smov (!%p219_p7, %s785_s16), 2 }
  0x51   : > { %314 = vadd.xlane.f32.xlu0 %v313_v4  ;;  %vm400_vm2 = vcmp.eq.s32.totalorder %v262_v21, %v399_v22  ;;  %v285_v32 = vsub.s32 2, %v262_v21  ;;  %v296_v33 = vsub.s32 3, %v262_v21  ;;  %v274_v34 = vsub.s32 1, %v262_v21  ;;  %s565_s21 = sshll.u32 %s948_s16, 3 }
  0x52   : > { %v263_v35 = vsub.s32 0, %v262_v21  ;;  %s222_s29 = scalar_lea.vmem %s934_s3, %s565_s21 }
  0x54   : > { %631 = vset.pattern.permute.xlu1 %v743_v9 }
  0x55   : > { %307 = vadd.xlane.f32.xlu0 %v306_v5  ;;  %280 = vperm.xlu1 %631, %v223_v7  }
  0x59   : > { %632 = vset.pattern.permute.xlu1 %v744_v18 }
  0x6b   : > { %269 = vperm.xlu0 %630, %v223_v7  }
  0xcf   : > { %v259_v28 = vpop.permute.xlu1 %258 }
  0xd4   : > { %v281_v29 = vpop.permute.xlu1 %280 }
  0xde   : > { %v315_v10 = vpop.xlane.xlu0 %314 }
  0xdf   : > { %v316_v11 = vmax.f32 %v315_v10, 1e-24 }
  0xe1   : > { %634 = vrsqrt.f32 %v316_v11 }
  0xe2   : > { %v308_v12 = vpop.xlane.xlu0 %307 }
  0xe3   : > { %v309_v13 = vmax.f32 %v308_v12, 1e-24 }
  0xe5   : > { %636 = vrsqrt.f32 %v309_v13 }
  0xea   : > { %v270_v37 = vpop.permute.xlu0 %269 }
  0xeb   : > { %v635_v14 = vpop.eup %634 }
  0xec   : > { %v318_v15 = vmul.f32 %v635_v14, %v303_v0 }
  0xee   : > { %573 = vmatpush3.xpose.msk.msra.mxu0 %vm305_vm0, %v318_v15 }
  0xef   : > { %v637_v16 = vpop.eup %636 }
  0xf0   : > { %v311_v17 = vmul.f32 %v637_v16, %v302_v1 }
  0xf2   : > { %575 = vmatmul.mubr.msk.f32.vlgmr.msra.gmra.mrb[0].mxu0 %vm305_vm0, %v311_v17 }
 0x1c5   : > { %v391_v23 = vpop.f32.mrb[0].mxu0 }
 0x1c6   : > { %v395_v24 = vsub.f32 1.0, %v391_v23  ;;  %v576_v25 = vpop.f32.mrb[1].mxu0 }
 0x1c8   : > { %v401_v26 = vsel %vm400_vm2, %v395_v24, 0.0 }
 0x1c9   : > { %v403_v27 = vsel %vm402_vm3, %v401_v26, 0.0 }
 0x1ca   : > { %404 = vadd.xlane.f32.xlu1 %v403_v27 }
 0x1db   : > { %291 = vperm.xlu1 %632, %v223_v7  }
 0x204   : > { %224 = vxpose.xlu1.b32.start.end [1/1] (short) (narrow) %v223_v7, 8 }
 0x257   : > { %v405_v30 = vpop.xlane.xlu1 %404 }
 0x258   : > { %406 = vxpose.xlu0.b32.start.end [1/1] (short) (narrow) %v405_v30, 8 }
 0x25b   : > { %v292_v31 = vpop.permute.xlu1 %291 }
 0x281   : > { %633 = vset.pattern.permute.xlu0 %v744_v18 }
 0x284   : > { %v240_v36 = vpop.trf.xlu1 }
 0x285   : > { %v286_v38 = vrot.slane %v240_v36, %v285_v32  ;;  %v297_v39 = vrot.slane %v240_v36, %v296_v33  ;;  %v275_v40 = vrot.slane %v240_v36, %v274_v34  ;;  %v264_v41 = vrot.slane %v240_v36, %v263_v35 }
 0x287   : > { %v276_v42 = vsub.f32 %v270_v37, %v275_v40  ;;  %v265_v43 = vsub.f32 %v259_v28, %v264_v41  ;;  %v287_v44 = vsub.f32 %v281_v29, %v286_v38  ;;  %v298_v45 = vsub.f32 %v292_v31, %v297_v39 }
 0x289   : > { %v277_v46 = vand.u32 2147483647, %v276_v42  ;;  %v266_v47 = vand.u32 2147483647, %v265_v43  ;;  %v288_v48 = vand.u32 2147483647, %v287_v44 }
 0x28a   : > { %v299_v49 = vand.u32 2147483647, %v298_v45 }
 0x28b   : > { %v278_v50 = vadd.f32 %v277_v46, %v266_v47 }
 0x28d   : > { %v289_v51 = vadd.f32 %v288_v48, %v278_v50 }
 0x28f   : > { %v300_v52 = vadd.f32 %v299_v49, %v289_v51 }
 0x291   : > { %v301_v53 = vmul.f32 0.05, %v300_v52 }
 0x293   : > { %v438_v54 = vmul.f32 2.0, %v301_v53 }
 0x295   : > { %v439_v55 = vsub.f32 %v395_v24, %v438_v54 }
 0x297   : > { %v440_v56 = vsub.f32 %v405_v30, %v439_v55 }
 0x299   : > { %v441_v60 = vadd.f32 0.1, %v440_v56 }
 0x29b   : > { %v442_v63 = vmax.f32 %v441_v60, 0.0 }
 0x2d8   : > { %v422_v57 = vpop.trf.xlu0 }
 0x2d9   : > { %v446_v58 = vrot.slane %v422_v57, %v263_v35 }
 0x2db   : > { %v447_v59 = vsub.f32 %v446_v58, %v439_v55 }
 0x2dd   : > { %v448_v61 = vadd.f32 0.1, %v447_v59 }
 0x2df   : > { %v449_v62 = vmax.f32 %v448_v61, 0.0 }
 0x2e1   : > { %v450_v0 = vsel %vm400_vm2, 0.0, %v449_v62 }
 0x2e2   : > { %v451_v1 = vadd.f32 %v450_v0, %v442_v63 }
 0x2e4   : > { %v452_v2 = vsel %vm402_vm3, %v451_v1, 0.0 }
 0x2e5   : > { %453 = vadd.xlane.f32.xlu1 %v452_v2 }
 0x372   : > { %v454_v3 = vpop.xlane.xlu1 %453 }
 0x373   : > { %v455_v4 = vrot.slane %v454_v3, 4 }
 0x375   : > { %v456_v5 = vadd.f32 %v455_v4, %v454_v3 }
 0x377   : > { %v457_v6 = vrot.slane %v456_v5, 2 }
 0x379   : > { %v458_v7 = vadd.f32 %v457_v6, %v456_v5 }
 0x37b   : > { %v459_v8 = vrot.slane %v458_v7, 1 }
 0x37d   : > { %v460_v9 = vadd.f32 %v459_v8, %v458_v7 }
 0x37f   : > { %577 = vpush %v460_v9 }
 0x3b0   : > { %s578_s5 = spop %577 }
 0x3b1   : > { %s464_s15 = smul.f32 0.14285715, %s578_s5 }
 0x3b3   : > { %v465_v10 = vstv %s464_s15 }
 0x3b4   : > { %466 = vst [vmem:[%s222_s29] sm:$0xff] %v465_v10 }
 0x3b5 PF: > { %p16_p8 = scmp.ge.s32.totalorder %s788_s17, 5   ;;  %s943_s12 = smov %s728_s13 }
 0x3b6   : > { %s944_s13 = smov %s732_s14  ;;  %s945_s14 = smov %s798_s20 }
 0x3b7   : > { %s946_s15 = smov %s788_s17  ;;  %18 = sbr.rel (!%p16_p8) target bundleno = 5 (0x5), region = 85 }
 0x3be   :  { %486 = vsyncpa [#allocation3], 1 }
 0x3bf   :  { %488 = vsyncpa [#allocation3 + $0x1], 1 }
 0x3c0   :  { %489 = vsyncpa [#allocation5], 1 }
 0x3c1   :  { %491 = vsyncpa [#allocation5 + $0x1], 1 }

</bundles_post_ra>
